<compile_context>
chip_gen: v7x
topology: tpu7x:2x2x1
jax: 0.10.0
libtpu: 0.0.40
codegen_flags: <defaults>
</compile_context>

<pallas_src>
import numpy as np
import jax
import jax.numpy as jnp
from jax.experimental import pallas as pl
from jax.experimental.pallas import tpu as pltpu


# ------------- config helper (mirrors Embeddings1D.get_stack_num) -------------
def get_stack_num(input_len, target_seq_len, embed_dim):
    if embed_dim == 768:
        for i in range(1, input_len + 1):
            if input_len % i == 0 and input_len // i <= target_seq_len:
                break
        return i
    else:
        for i in range(1, input_len + 1):
            root = np.sqrt(input_len // i)
            if (input_len % i == 0 and input_len // i <= target_seq_len
                    and int(root + 0.5) ** 2 == input_len // i):
                break
        return i


def _pick_tile_s(S, E, out_itemsize):
    """Largest sublane-aligned divisor of S under a ~2 MiB output-tile byte budget."""
    budget = 2 << 20
    max_tile = max(8, budget // (E * out_itemsize))
    if S <= max_tile:
        return S                    # single tile; full-dim block satisfies the (8,128) rule
    best = 0
    for t in range(8, int(max_tile) + 1, 8):
        if S % t == 0:
            best = t
    if best:
        return best
    # TODO(synk): ragged S with no sublane-aligned divisor — fall back to one full-S tile.
    return S


# ------------------------------- Pallas kernel --------------------------------
def embeddings1d_kernel(xp_ref, w_ref, params_ref, posb_ref, o_ref):
    # xp_ref:     (tile_S, CK)  bf16 patch-major rows of one batch element
    # w_ref:      (CK, E)       bf16 flattened conv weight
    # params_ref: (2, E)        f32: row 0 = conv bias, row 1 = ln gamma
    # posb_ref:   (tile_S, E)   bf16 positional embedding + ln beta (batch-invariant)
    # o_ref:      (tile_S, E)
    y = jnp.dot(xp_ref[...], w_ref[...], preferred_element_type=jnp.float32)
    y = y + params_ref[0:1, :]                                   # conv bias (pre-LN), f32
    # LayerNorm over embed dim (eps=1e-5, biased variance), fused single-pass stats.
    mean = jnp.mean(y, axis=-1, keepdims=True)
    mean_sq = jnp.mean(y * y, axis=-1, keepdims=True)
    var = jnp.maximum(mean_sq - mean * mean, 0.0)
    yn = (y - mean) * jax.lax.rsqrt(var + 1e-5)
    yn = yn * params_ref[1:2, :]                                 # gamma (beta folded into posb)
    o_ref[...] = (yn + posb_ref[...].astype(jnp.float32)).astype(o_ref.dtype)


def embeddings1d_forward(x, conv_w, conv_b, ln_g, ln_b, pos_table,
                         stack_num, embed_dim, padding_idx=1,
                         compute_dtype=jnp.bfloat16):
    B, C, L = x.shape
    K = stack_num
    S = L // K
    E = embed_dim
    CK = C * K

    # position ids are deterministic: arange(padding_idx+1, S+padding_idx+1)
    assert pos_table.shape[0] >= S + padding_idx + 1, (
        "position_embeddings table too small for sequence length "
        f"(need {S + padding_idx + 1} rows, have {pos_table.shape[0]})")

    out_dtype = x.dtype
    cd_b = jnp.dtype(compute_dtype).itemsize
    out_b = jnp.dtype(out_dtype).itemsize

    # --- glue (fused under jit): patch relayout + weight flatten + bf16 casts ----
    xp = (x.reshape(B, C, S, K).transpose(0, 2, 1, 3)
           .reshape(B, S, CK).astype(compute_dtype))             # (B, S, CK)
    w = conv_w.reshape(E, CK).T.astype(compute_dtype)            # (CK, E)
    params = jnp.stack([conv_b, ln_g], axis=0).astype(jnp.float32)          # (2, E)
    posb = (pos_table[padding_idx + 1: padding_idx + 1 + S] + ln_b
            ).astype(compute_dtype)                              # (S, E) — NOT broadcast over B

    # --- tiling: exact divisors of S, no padding, batch is a grid axis -----------
    tile_S = _pick_tile_s(S, E, out_b)
    s_tiles = S // tile_S

    cost = pl.CostEstimate(
        flops=2 * B * S * CK * E,
        transcendentals=B * S,                                   # one rsqrt per row
        bytes_accessed=(B * S * CK * cd_b + CK * E * cd_b + 2 * E * 4
                        + S * E * cd_b + B * S * E * out_b),
    )

    # actual double-buffered footprint (+ headroom), capped at 32 MiB for v7x safety
    vmem_bytes = (2 * tile_S * (CK * cd_b + E * cd_b + E * out_b)
                  + 2 * (CK * E * cd_b + 2 * E * 4))
    vmem_limit = int(min(32 << 20, max(16 << 20, 2 * vmem_bytes)))

    out = pl.pallas_call(
        embeddings1d_kernel,
        out_shape=jax.ShapeDtypeStruct((B, S, E), out_dtype),
        grid_spec=pltpu.PrefetchScalarGridSpec(
            num_scalar_prefetch=0,
            grid=(s_tiles, B),          # batch innermost -> posb tile reused across all B
            in_specs=[
                pl.BlockSpec((None, tile_S, CK), lambda s, b: (b, s, 0)),
                pl.BlockSpec((CK, E), lambda s, b: (0, 0)),
                pl.BlockSpec((2, E), lambda s, b: (0, 0)),
                pl.BlockSpec((tile_S, E), lambda s, b: (s, 0)),   # ignores b
            ],
            out_specs=pl.BlockSpec((None, tile_S, E), lambda s, b: (b, s, 0)),
        ),
        compiler_params=pltpu.CompilerParams(
            dimension_semantics=("parallel", "parallel"),
            vmem_limit_bytes=vmem_limit,
        ),
        cost_estimate=cost,
    )(xp, w, params, posb)

    return out                                                    # (B, S, E)


_forward_jit = jax.jit(
    embeddings1d_forward,
    static_argnames=("stack_num", "embed_dim", "padding_idx", "compute_dtype"))


# ------------------------- pure-JAX reference check ---------------------------
def reference_forward(x, conv_w, conv_b, ln_g, ln_b, pos_table,
                      stack_num, embed_dim, padding_idx=1):
    B, C, L = x.shape
    K = stack_num
    S = L // K
    y = jax.lax.conv_general_dilated(
        x, conv_w, window_strides=(K,), padding="VALID",
        dimension_numbers=("NCH", "OIH", "NCH"))
    y = y + conv_b[None, :, None]
    y = jnp.transpose(y, (0, 2, 1))                              # (B, S, E)
    mean = jnp.mean(y, axis=-1, keepdims=True)
    var = jnp.mean((y - mean) ** 2, axis=-1, keepdims=True)
    yn = (y - mean) / jnp.sqrt(var + 1e-5) * ln_g + ln_b
    ids = jnp.arange(padding_idx + 1, S + padding_idx + 1)
    return yn + pos_table[ids][None]


if __name__ == "__main__":
    # Module config (embed_dim != 768 branch -> module returns (x, patched_dims))
    B, C, L = 2, 4, 144
    embed_dim = 128
    target_seq_len = 64

    stack_num = get_stack_num(L, target_seq_len, embed_dim)      # -> 4
    S = L // stack_num                                           # -> 36
    patched_dimensions = (int(np.sqrt(S)), int(np.sqrt(S)))      # -> (6, 6)

    key = jax.random.PRNGKey(0)
    k1, k2, k3, k4 = jax.random.split(key, 4)
    # deterministic synthetic parameters (conv_init not given -> scaled normal)
    x = jax.random.normal(k1, (B, C, L), dtype=jnp.float32)
    conv_w = jax.random.normal(k2, (embed_dim, C, stack_num), dtype=jnp.float32) * 0.02
    conv_b = jax.random.normal(k3, (embed_dim,), dtype=jnp.float32) * 0.02
    ln_g = jnp.ones((embed_dim,), jnp.float32)
    ln_b = jnp.zeros((embed_dim,), jnp.float32)
    pos_table = jax.random.normal(k4, (target_seq_len, embed_dim), jnp.float32) * 0.02
    pos_table = pos_table.at[1].set(0.0)    # padding_idx row zeroed like nn.Embedding

    out = _forward_jit(x, conv_w, conv_b, ln_g, ln_b, pos_table,
                       stack_num=stack_num, embed_dim=embed_dim)
    out = jax.block_until_ready(out)

    ref = reference_forward(x, conv_w, conv_b, ln_g, ln_b, pos_table,
                            stack_num, embed_dim)
    assert out.shape == (B, S, embed_dim)
    # bf16-streamed operands with f32 accumulation / LN math -> ~0.5-1% error vs f32 ref
    np.testing.assert_allclose(np.asarray(out), np.asarray(ref), atol=2e-2, rtol=2e-2)

    result = (out, patched_dimensions)      # embed_dim != 768 branch of forward()
    print("KERNEL_OK")
</pallas_src>

<mosaic_0001>
module attributes {stable_mosaic.version = 11 : i64} {
  func.func @embeddings1d_kernel(%arg0: i32, %arg1: i32, %arg2: memref<1x36x16xbf16, #tpu.memory_space<vmem>>, %arg3: memref<16x128xbf16, #tpu.memory_space<vmem>>, %arg4: memref<2x128xf32, #tpu.memory_space<vmem>>, %arg5: memref<36x128xbf16, #tpu.memory_space<vmem>>, %arg6: memref<1x36x128xf32, #tpu.memory_space<vmem>>) attributes {dimension_semantics = [#tpu.dimension_semantics<parallel>, #tpu.dimension_semantics<parallel>], iteration_bounds = array<i64: 1, 2>, scalar_prefetch = 0 : i64, scratch_operands = 0 : i64, tpu.core_type = #tpu.core_type<tc>, window_params = [{transform_indices = @transform_0, window_bounds = array<i64: 1, 36, 16>}, {pipeline_mode = #tpu.pipeline_mode<synchronous>, transform_indices = @transform_1, window_bounds = array<i64: 16, 128>}, {pipeline_mode = #tpu.pipeline_mode<synchronous>, transform_indices = @transform_2, window_bounds = array<i64: 2, 128>}, {transform_indices = @transform_3, window_bounds = array<i64: 36, 128>}, {transform_indices = @transform_4, window_bounds = array<i64: 1, 36, 128>}]} {
    %c0 = arith.constant 0 : index
    %c0_0 = arith.constant 0 : index
    %c0_1 = arith.constant 0 : index
    %0 = vector.load %arg2[%c0, %c0_0, %c0_1] : memref<1x36x16xbf16, #tpu.memory_space<vmem>>, vector<1x36x16xbf16>
    %1 = vector.shape_cast %0 : vector<1x36x16xbf16> to vector<36x16xbf16>
    %c0_2 = arith.constant 0 : index
    %c0_3 = arith.constant 0 : index
    %2 = vector.load %arg3[%c0_2, %c0_3] : memref<16x128xbf16, #tpu.memory_space<vmem>>, vector<16x128xbf16>
    %cst = arith.constant dense<0.000000e+00> : vector<36x128xf32>
    %3 = tpu.matmul %1, %2, %cst {dimension_numbers = #tpu.dot_dimension_numbers<[1], [0], [0], [1], [0, 0, 1, 1], [], []>} : vector<36x16xbf16>, vector<16x128xbf16>, vector<36x128xf32> -> vector<36x128xf32>
    %c0_4 = arith.constant 0 : index
    %c0_5 = arith.constant 0 : index
    %4 = vector.load %arg4[%c0_4, %c0_5] : memref<2x128xf32, #tpu.memory_space<vmem>>, vector<1x128xf32>
    %5 = vector.broadcast %4 : vector<1x128xf32> to vector<36x128xf32>
    %6 = arith.addf %3, %5 : vector<36x128xf32>
    %cst_6 = arith.constant dense<0.000000e+00> : vector<36xf32>
    %7 = vector.multi_reduction <add>, %6, %cst_6 [1] : vector<36x128xf32> to vector<36xf32>
    %8 = vector.shape_cast %7 : vector<36xf32> to vector<36x1xf32>
    %cst_7 = arith.constant 1.280000e+02 : f32
    %9 = vector.broadcast %cst_7 : f32 to vector<36x1xf32>
    %10 = arith.divf %8, %9 : vector<36x1xf32>
    %11 = arith.mulf %6, %6 : vector<36x128xf32>
    %cst_8 = arith.constant dense<0.000000e+00> : vector<36xf32>
    %12 = vector.multi_reduction <add>, %11, %cst_8 [1] : vector<36x128xf32> to vector<36xf32>
    %13 = vector.shape_cast %12 : vector<36xf32> to vector<36x1xf32>
    %cst_9 = arith.constant 1.280000e+02 : f32
    %14 = vector.broadcast %cst_9 : f32 to vector<36x1xf32>
    %15 = arith.divf %13, %14 : vector<36x1xf32>
    %16 = arith.mulf %10, %10 : vector<36x1xf32>
    %17 = arith.subf %15, %16 : vector<36x1xf32>
    %cst_10 = arith.constant 0.000000e+00 : f32
    %18 = vector.broadcast %cst_10 : f32 to vector<36x1xf32>
    %19 = arith.maximumf %17, %18 : vector<36x1xf32>
    %20 = vector.broadcast %10 : vector<36x1xf32> to vector<36x128xf32>
    %21 = arith.subf %6, %20 : vector<36x128xf32>
    %cst_11 = arith.constant 9.99999974E-6 : f32
    %22 = vector.broadcast %cst_11 : f32 to vector<36x1xf32>
    %23 = arith.addf %19, %22 : vector<36x1xf32>
    %24 = math.rsqrt %23 : vector<36x1xf32>
    %25 = vector.broadcast %24 : vector<36x1xf32> to vector<36x128xf32>
    %26 = arith.mulf %21, %25 : vector<36x128xf32>
    %c1 = arith.constant 1 : index
    %c0_12 = arith.constant 0 : index
    %27 = vector.load %arg4[%c1, %c0_12] : memref<2x128xf32, #tpu.memory_space<vmem>>, vector<1x128xf32>
    %28 = vector.broadcast %27 : vector<1x128xf32> to vector<36x128xf32>
    %29 = arith.mulf %26, %28 : vector<36x128xf32>
    %c0_13 = arith.constant 0 : index
    %c0_14 = arith.constant 0 : index
    %30 = vector.load %arg5[%c0_13, %c0_14] : memref<36x128xbf16, #tpu.memory_space<vmem>>, vector<36x128xbf16>
    %31 = arith.extf %30 : vector<36x128xbf16> to vector<36x128xf32>
    %32 = arith.addf %29, %31 : vector<36x128xf32>
    %c0_15 = arith.constant 0 : index
    %c0_16 = arith.constant 0 : index
    %c0_17 = arith.constant 0 : index
    %33 = vector.load %arg6[%c0_15, %c0_16, %c0_17] : memref<1x36x128xf32, #tpu.memory_space<vmem>>, vector<1x36x128xf32>
    %34 = vector.shape_cast %33 : vector<1x36x128xf32> to vector<36x128xf32>
    %35 = vector.shape_cast %32 : vector<36x128xf32> to vector<1x36x128xf32>
    tpu.vector_store %arg6[%c0_15, %c0_16, %c0_17], %35 {strides = array<i32>} : memref<1x36x128xf32, #tpu.memory_space<vmem>>, vector<1x36x128xf32>,
    return
  }
  func.func @transform_0(%arg0: i32, %arg1: i32) -> (i32, i32, i32) {
    %c0_i32 = arith.constant 0 : i32
    %c0_i32_0 = arith.constant 0 : i32
    return %arg1, %arg0, %c0_i32 : i32, i32, i32
  }
  func.func @transform_1(%arg0: i32, %arg1: i32) -> (i32, i32) {
    %c0_i32 = arith.constant 0 : i32
    %c0_i32_0 = arith.constant 0 : i32
    %c0_i32_1 = arith.constant 0 : i32
    return %c0_i32, %c0_i32_0 : i32, i32
  }
  func.func @transform_2(%arg0: i32, %arg1: i32) -> (i32, i32) {
    %c0_i32 = arith.constant 0 : i32
    %c0_i32_0 = arith.constant 0 : i32
    %c0_i32_1 = arith.constant 0 : i32
    return %c0_i32, %c0_i32_0 : i32, i32
  }
  func.func @transform_3(%arg0: i32, %arg1: i32) -> (i32, i32) {
    %c0_i32 = arith.constant 0 : i32
    %c0_i32_0 = arith.constant 0 : i32
    return %arg0, %c0_i32 : i32, i32
  }
  func.func @transform_4(%arg0: i32, %arg1: i32) -> (i32, i32, i32) {
    %c0_i32 = arith.constant 0 : i32
    %c0_i32_0 = arith.constant 0 : i32
    return %arg1, %arg0, %c0_i32 : i32, i32, i32
  }
}

</mosaic_0001>

<bundles_post_ra>
// kernel: embeddings1d_forward.1
= control target key start
LH: loop header
LB: loop body
LE: loop exit
PB: predicated region body
PF: predicated region fallthrough
CT: control target
= control target key end

     0   :  { %s704_s15 = smov 0   ;;  %s706_s16 = smov 0   ;;  %s789_s0 = inlined_call_operand.vmem [shape: bf16[2,36,16], index: 0, kind: input, shape index: {}]   ;;  %s790_s1 = inlined_call_operand.vmem [shape: bf16[16,128], index: 1, kind: input, shape index: {}]   ;;  %s791_s2 = inlined_call_operand.vmem [shape: f32[2,128], index: 2, kind: input, shape index: {}]   ;;  %s792_s3 = inlined_call_operand.vmem [shape: bf16[36,128], index: 3, kind: input, shape index: {}]   ;;  %s793_s4 = inlined_call_operand.vmem [shape: f32[2,36,128], index: 4, kind: output, shape index: {}]  }
   0x1   :  { %s708_s17 = smov 0  }
   0x2 LB: > { %s23_s18 = sadd.s32 1, %s671_s16  ;;  %p568_p0 = scmp.ge.s32.totalorder %s675_s17, 1  ;;  %s675_s17 = sphi %s708_s17, %s14_s17   ;;  %s671_s16 = sphi %s706_s16, %s795_s16   ;;  %s667_s15 = sphi %s704_s15, %s794_s15  }
   0x3   : > { %p24_p1 = scmp.ge.s32.totalorder %s23_s18, 2  ;;  %p194_p2 = scmp.lt.s32.totalorder %s675_s17, 3 }
   0x5   : > { %s797_s18 = smov (%p24_p1, %s23_s18), 0  ;;  %p195_p3 = pnand %p568_p0, %p194_p2 }
   0x6   : > { %v639_v0 = vld [vmem:[%s790_s1] sm:$0xff] (!%p195_p3)   ;;  %v677_v1 = vmov (!%p195_p3), 0.0   ;;  %p234_p4 = scmp.lt.s32.totalorder (!%p195_p3), %s667_s15, 1  ;;  %vm678_vm0 = vmmov (!%p195_p3), 0   ;;  %vm291_vm1 = vcmask (!%p195_p3), 130048   ;;  %vm365_vm2 = vcmask (!%p195_p3), 1043456  }
   0x7   : > { %198 = sbr.rel (%p195_p3) target bundleno = 418 (0x1a2), region = 36  ;;  %595 = vmatprep.subr.bf16.mxu0 (!%p195_p3), %v677_v1  ;;  %609 = vmatprep.subr.bf16.mxu1 (!%p195_p3), %v677_v1  ;;  %v571_v5 = vld [vmem:[%s791_s2] ss:$0 sm:$0xff] (!%p195_p3) }
   0x8   : > { %596 = vmatpush3.bf16.msra.mxu0 (!%p195_p3), %v639_v0  ;;  %610 = vmatpush3.bf16.msra.mxu1 (!%p195_p3), %v639_v0 }
   0x9   : > { %597 = vmatprep.mubr.msk.bf16.mxu0 (!%p195_p3), %vm678_vm0, %v677_v1  ;;  %601 = vmatprep.mubr.msk.bf16.mxu1 (!%p195_p3), %vm678_vm0, %v677_v1 }
   0xe   : > { %s799_s15 = smov (!%p234_p4, %s667_s15), 1 }
   0xf   : > { %s611_s21 = smul.u32 20, %s799_s15 }
  0x10   : > { %s612_s29 = smul.u32 40, %s799_s15 }
  0x11   : > { %s241_s24 = scalar_lea.vmem %s789_s0, %s611_s21 }
  0x12   : > { %v640_v2 = vld [vmem:[%s241_s24] sm:$0xff]   ;;  %v641_v3 = vld [vmem:[%s241_s24 + $0x8] sm:$0xff]   ;;  %v642_v4 = vld [vmem:[%s241_s24 + $0x10] ss:$0 sps:$4 sm:$0x33]   ;;  %s257_s10 = scalar_lea.vmem %s793_s4, %s612_s29 }
  0x13   : > { %598 = vmatmul.mubr.msk.bf16.vlgmr.msra.gmra.mrb[0].mxu0 %vm291_vm1, %v640_v2  ;;  %602 = vmatmul.mubr.msk.bf16.vlgmr.msra.gmra.mrb[0].mxu1 %vm291_vm1, %v641_v3 }
  0x14   : > { %605 = vmatprep.mubr.msk.bf16.mxu1 %vm678_vm0, %v677_v1 }
  0x1b   : > { %606 = vmatmul.mubr.msk.bf16.gmra.mrb[4].mxu1 %vm291_vm1, %v642_v4 }
  0xe6   : > { %v335_v6 = vpop.f32.mrb[0].mxu0  ;;  %v343_v8 = vpop.f32.mrb[0].mxu1 }
  0xe7   : > { %v734_v7 = vadd.f32 %v571_v5, %v335_v6  ;;  %v599_v9 = vpop.f32.mrb[1].mxu0  ;;  %v736_v10 = vadd.f32 %v571_v5, %v343_v8  ;;  %v603_v11 = vpop.f32.mrb[1].mxu1  ;;  %v583_v6 = vld [vmem:[%s792_s3] sm:$0xff]  }
  0xe8   : > { %v338_v12 = vpop.f32.mrb[2].mxu0  ;;  %v346_v13 = vpop.f32.mrb[2].mxu1 }
  0xe9   : > { %357 = vadd.xlane.f32.xlu0 %v734_v7  ;;  %v600_v14 = vpop.f32.mrb[3].mxu0  ;;  %361 = vadd.xlane.f32.xlu1 %v736_v10  ;;  %v604_v15 = vpop.f32.mrb[3].mxu1  ;;  %v740_v16 = vadd.f32 %v571_v5, %v338_v12  ;;  %v742_v17 = vadd.f32 %v571_v5, %v346_v13  ;;  %v375_v22 = vmul.f32 %v734_v7, %v734_v7  ;;  %v579_v12 = vld [vmem:[%s791_s2 + $0x1] ss:$0 sm:$0xff] }
  0xea   : > { %v377_v26 = vmul.f32 %v736_v10, %v736_v10  ;;  %v585_v14 = vunpack.c.h.bf16 %v583_v6 }
  0xeb   : > { %v376_v19 = vmul.f32 %v740_v16, %v740_v16  ;;  %v378_v28 = vmul.f32 %v742_v17, %v742_v17 }
  0xed   : > { %359 = vadd.xlane.f32.xlu0 %v740_v16  ;;  %363 = vadd.xlane.f32.xlu1 %v742_v17 }
  0xee   : > { %v351_v18 = vpop.f32.mrb[4].mxu1 }
  0xef   : > { %v748_v20 = vadd.f32 %v571_v5, %v351_v18  ;;  %v607_v21 = vpop.f32.mrb[5].mxu1  ;;  %v584_v18 = vunpack.c.l.bf16 %v583_v6 }
  0xf0   : > { %v354_v23 = vpop.f32.mrb[6].mxu1 }
  0xf1   : > { %382 = vadd.xlane.f32.xlu0 %v376_v19  ;;  %v608_v24 = vpop.f32.mrb[7].mxu1  ;;  %380 = vadd.xlane.f32.xlu1 %v375_v22  ;;  %v366_v25 = vsel %vm365_vm2, %v748_v20, 0.0  ;;  %v379_v27 = vmul.f32 %v748_v20, %v748_v20  ;;  %v590_v22 = vld [vmem:[%s792_s3 + $0x8] sm:$0xff]  }
  0xf3   : > { %v388_v29 = vsel %vm365_vm2, %v379_v27, 0.0 }
  0xf5   : > { %367 = vadd.xlane.f32.xlu0 %v366_v25  ;;  %384 = vadd.xlane.f32.xlu1 %v377_v26  ;;  %v588_v26 = vunpack.c.l.bf16 %v590_v22 }
  0xf9   : > { %386 = vadd.xlane.f32.xlu0 %v378_v28  ;;  %389 = vadd.xlane.f32.xlu1 %v388_v29  ;;  %v445_v29 = vld [vmem:[%s792_s3 + $0x10] sm:$0x3] }
 0x176   : > { %v358_v30 = vpop.xlane.xlu0 %357  ;;  %v362_v31 = vpop.xlane.xlu1 %361 }
 0x177   : > { %v370_v35 = vmul.f32 0.0078125, %v358_v30  ;;  %v372_v40 = vmul.f32 0.0078125, %v362_v31 }
 0x179   : > { %v396_v41 = vmul.f32 %v370_v35, %v370_v35  ;;  %v398_v49 = vmul.f32 %v372_v40, %v372_v40  ;;  %v411_v11 = vsub.f32 %v734_v7, %v370_v35  ;;  %v413_v7 = vsub.f32 %v736_v10, %v372_v40 }
 0x17a   : > { %v360_v32 = vpop.xlane.xlu0 %359  ;;  %v364_v33 = vpop.xlane.xlu1 %363  ;;  %v589_v10 = vunpack.c.h.bf16 %v590_v22 }
 0x17b   : > { %v371_v34 = vmul.f32 0.0078125, %v360_v32  ;;  %v373_v46 = vmul.f32 0.0078125, %v364_v33 }
 0x17d   : > { %v397_v37 = vmul.f32 %v371_v34, %v371_v34  ;;  %v399_v57 = vmul.f32 %v373_v46, %v373_v46  ;;  %v412_v8 = vsub.f32 %v740_v16, %v371_v34  ;;  %v414_v28 = vsub.f32 %v742_v17, %v373_v46 }
 0x17e   : > { %v383_v36 = vpop.xlane.xlu0 %382  ;;  %v381_v38 = vpop.xlane.xlu1 %380 }
 0x17f   : > { %v392_v39 = vmul.f32 0.0078125, %v383_v36  ;;  %v391_v42 = vmul.f32 0.0078125, %v381_v38  ;;  %v450_v36 = vunpack.c.l.bf16 %v445_v29 }
 0x181   : > { %v402_v43 = vsub.f32 %v392_v39, %v397_v37  ;;  %v401_v44 = vsub.f32 %v391_v42, %v396_v41 }
 0x182   : > { %v368_v45 = vpop.xlane.xlu0 %367  ;;  %v385_v48 = vpop.xlane.xlu1 %384 }
 0x183   : > { %v407_v47 = vmax.f32 %v402_v43, 0.0  ;;  %v406_v50 = vmax.f32 %v401_v44, 0.0  ;;  %v393_v51 = vmul.f32 0.0078125, %v385_v48  ;;  %v374_v52 = vmul.f32 0.0078125, %v368_v45 }
 0x185   : > { %v417_v53 = vadd.f32 1e-05, %v407_v47  ;;  %v416_v54 = vadd.f32 1e-05, %v406_v50  ;;  %v403_v55 = vsub.f32 %v393_v51, %v398_v49  ;;  %v400_v61 = vmul.f32 %v374_v52, %v374_v52 }
 0x186   : > { %v387_v56 = vpop.xlane.xlu0 %386  ;;  %v390_v58 = vpop.xlane.xlu1 %389  ;;  %v415_v32 = vsub.f32 %v748_v20, %v374_v52 }
 0x187   : > { %643 = vrsqrt.f32 %v417_v53  ;;  %v394_v59 = vmul.f32 0.0078125, %v387_v56  ;;  %v408_v60 = vmax.f32 %v403_v55, 0.0  ;;  %v395_v62 = vmul.f32 0.0078125, %v390_v58 }
 0x188   : > { %645 = vrsqrt.f32 %v416_v54 }
 0x189   : > { %v404_v63 = vsub.f32 %v394_v59, %v399_v57  ;;  %v418_v0 = vadd.f32 1e-05, %v408_v60  ;;  %v405_v1 = vsub.f32 %v395_v62, %v400_v61 }
 0x18b   : > { %v409_v2 = vmax.f32 %v404_v63, 0.0  ;;  %647 = vrsqrt.f32 %v418_v0  ;;  %v410_v3 = vmax.f32 %v405_v1, 0.0 }
 0x18d   : > { %v419_v4 = vadd.f32 1e-05, %v409_v2  ;;  %v420_v5 = vadd.f32 1e-05, %v410_v3 }
 0x18f   : > { %649 = vrsqrt.f32 %v419_v4 }
 0x190   : > { %651 = vrsqrt.f32 %v420_v5 }
 0x191   : > { %v644_v9 = vpop.eup %643 }
 0x192   : > { %v646_v13 = vpop.eup %645  ;;  %v427_v15 = vmul.f32 %v644_v9, %v412_v8 }
 0x193   : > { %v426_v19 = vmul.f32 %v646_v13, %v411_v11 }
 0x194   : > { %v437_v21 = vmul.f32 %v579_v12, %v427_v15 }
 0x195   : > { %v436_v16 = vmul.f32 %v579_v12, %v426_v19  ;;  %v648_v23 = vpop.eup %647 }
 0x196   : > { %v452_v24 = vadd.f32 %v585_v14, %v437_v21  ;;  %v428_v27 = vmul.f32 %v648_v23, %v413_v7 }
 0x197   : > { %v451_v25 = vadd.f32 %v584_v18, %v436_v16 }
 0x198   : > { %457 = vst [vmem:[%s257_s10 + $0x8] sm:$0xff] %v452_v24  ;;  %v438_v31 = vmul.f32 %v579_v12, %v428_v27 }
 0x199   : > { %v650_v30 = vpop.eup %649  ;;  %456 = vst [vmem:[%s257_s10] sm:$0xff] %v451_v25 }
 0x19a   : > { %v652_v33 = vpop.eup %651  ;;  %v429_v34 = vmul.f32 %v650_v30, %v414_v28  ;;  %v453_v35 = vadd.f32 %v588_v26, %v438_v31 }
 0x19b   : > { %v430_v37 = vmul.f32 %v652_v33, %v415_v32 }
 0x19c   : > { %v439_v38 = vmul.f32 %v579_v12, %v429_v34  ;;  %458 = vst [vmem:[%s257_s10 + $0x10] sm:$0xff] %v453_v35 }
 0x19d   : > { %v440_v39 = vmul.f32 %v579_v12, %v430_v37 }
 0x19e   : > { %v454_v17 = vadd.f32 %v589_v10, %v439_v38 }
 0x19f   : > { %v455_v40 = vadd.f32 %v450_v36, %v440_v39 }
 0x1a0   : > { %459 = vst [vmem:[%s257_s10 + $0x18] sm:$0xff] %v454_v17 }
 0x1a1   : > { %460 = vst [vmem:[%s257_s10 + $0x20] sm:$0xf] %v455_v40 }
 0x1a2 PF: > { %s14_s17 = sadd.s32 1, %s675_s17   ;;  %s794_s15 = smov %s671_s16 }
 0x1a3   : > { %p11_p5 = scmp.ge.s32.totalorder %s14_s17, 4   ;;  %s795_s16 = smov %s797_s18 }
 0x1a5   :  { %13 = sbr.rel (!%p11_p5) target bundleno = 2 (0x2), region = 69 }

</bundles_post_ra>
